<compile_context>
chip_gen: v7x
topology: tpu7x:2x2x1
jax: 0.10.0
libtpu: 0.0.40
codegen_flags: <defaults>
</compile_context>

<pallas_src>
import functools
from typing import NamedTuple

import jax
import jax.numpy as jnp
from jax.experimental import pallas as pl
from jax.experimental.pallas import tpu as pltpu


def _round_up(v: int, m: int) -> int:
    return (v + m - 1) // m * m


def _vmem_capacity_bytes() -> int:
    """Physical VMEM per core; conservative fallback if the query fails."""
    try:
        cap = int(pltpu.get_tpu_info().vmem_capacity_bytes)
        if cap > 0:
            return cap
    except Exception:
        pass
    return 64 << 20  # v7x-sized fallback works everywhere


class FFNPlan(NamedTuple):
    tm: int          # row tile
    tk: int          # hidden-dim tile
    d_in: int
    d0: int
    d1: int
    d_in_p: int      # padded (lane-aligned) dims
    d0_p: int
    d1_p: int
    k_tiles: int
    w_bufs: int      # buffer count for the weight BlockSpecs
    vmem_limit: int


def plan_ffn(m: int, d_in: int, d0: int, d1: int, dtype) -> FFNPlan:
    eb = jnp.dtype(dtype).itemsize
    d_in_p = _round_up(d_in, 128)
    d1_p = _round_up(d1, 128)

    cap = _vmem_capacity_bytes()
    budget = cap * 3 // 4          # ~48 MiB on v7x, ~96 MiB on v5e/v6e

    m_cap = max(8, _round_up(m, 8))
    tm_cands = [t for t in (1024, 512, 256, 128, 64, 32, 16, 8) if t <= m_cap] or [8]

    def footprint(tm: int, tk: int, w_bufs: int) -> int:
        return (
            2 * tm * d_in_p * eb            # x row tile, double-buffered
            + w_bufs * d_in_p * tk * eb     # W1 tile(s)
            + w_bufs * tk * d1_p * eb       # W2 tile(s)
            + 2 * tm * d1_p * eb            # output tile, double-buffered
            + tm * d1_p * 4                 # f32 accumulator scratch
            + tm * tk * (4 + eb)            # f32 intermediate h + cast copy
            + (2 << 20)                     # misc headroom
        )

    # --- Path 1: whole hidden dim resident; weights DMA'd once, 1 buffer. ---
    d0_full = _round_up(d0, 128)
    tm_resident = None
    for tm in tm_cands:
        if footprint(tm, d0_full, 1) <= budget:
            tm_resident = tm
            break

    if tm_resident is not None and tm_resident >= min(128, m_cap):
        tm, tk, w_bufs = tm_resident, d0_full, 1
    else:
        # --- Path 2: stream the hidden dim (inner grid axis + accumulator). --
        tm = tk = None
        tk_cands = [t for t in (2048, 1024, 512, 256, 128) if t <= d0_full] or [128]
        for tm_c in tm_cands:               # maximize TM first (amortizes
            for tk_c in tk_cands:           # per-row-tile weight re-fetch)
                if footprint(tm_c, tk_c, 2) <= budget:
                    tm, tk = tm_c, tk_c
                    break
            if tm is not None:
                break
        if tm is None:
            tm, tk = 8, 128                 # last resort
        w_bufs = 2
        # If full residency allows a TM at least as big, prefer it.
        if tm_resident is not None and tm_resident >= tm:
            tm, tk, w_bufs = tm_resident, d0_full, 1

    # v7x has 2 TensorCores: make sure the "parallel" row axis has >= 2 steps.
    if m > 8 and -(-m // tm) < 2:
        tm = max(8, _round_up(-(-m // 2), 8))

    d0_p = _round_up(d0, tk)
    k_tiles = d0_p // tk
    if k_tiles == 1:
        w_bufs = 1                          # constant index -> never re-fetched

    vmem_needed = footprint(tm, tk, w_bufs) + (4 << 20)
    vmem_limit = int(max(32 << 20, min(vmem_needed, cap * 7 // 8)))
    return FFNPlan(tm, tk, d_in, d0, d1, d_in_p, d0_p, d1_p, k_tiles, w_bufs,
                   vmem_limit)


def pad_ffn_weights(w1_t, w2_t, plan: FFNPlan):
    """Pad weights to the planned tile-aligned shapes. Call this ONCE, outside
    the per-step path, so the pad's HBM read+write is not paid every call."""
    w1_p = w1_t
    if w1_t.shape != (plan.d_in_p, plan.d0_p):
        w1_p = jnp.pad(w1_t, ((0, plan.d_in_p - plan.d_in),
                              (0, plan.d0_p - plan.d0)))
    w2_p = w2_t
    if w2_t.shape != (plan.d0_p, plan.d1_p):
        w2_p = jnp.pad(w2_t, ((0, plan.d0_p - plan.d0),
                              (0, plan.d1_p - plan.d1)))
    return w1_p, w2_p


def ffn_kernel(x_ref, w1_ref, b1_ref, w2_ref, b2_ref, o_ref, acc_ref):
    # x_ref:  (TM, D_in_p)   VMEM row tile (constant across k)
    # w1_ref: (D_in_p, TK)   VMEM weight tile (resident if k_tiles == 1)
    # b1_ref: (1,)           SMEM scalar bias
    # w2_ref: (TK, D1_p)     VMEM weight tile
    # b2_ref: (1,)           SMEM scalar bias
    # o_ref:  (TM, D1_p)     VMEM output tile (constant across k)
    # acc_ref:(TM, D1_p) f32 VMEM accumulator scratch
    k = pl.program_id(1)

    @pl.when(k == 0)
    def _():
        acc_ref[...] = jnp.zeros_like(acc_ref)

    h = jnp.dot(x_ref[...], w1_ref[...], preferred_element_type=jnp.float32)
    h = jnp.maximum(h + b1_ref[0], 0.0)              # bias + ReLU on f32 accum
    acc_ref[...] += jnp.dot(h.astype(w2_ref.dtype), w2_ref[...],
                            preferred_element_type=jnp.float32)

    @pl.when(k == pl.num_programs(1) - 1)
    def _():
        o_ref[...] = (acc_ref[...] + b2_ref[0]).astype(o_ref.dtype)


@functools.partial(jax.jit, static_argnames=("plan",))
def ffn_pallas_apply(x, w1_p, b1, w2_p, b2, plan: FFNPlan):
    """x: [B, T, D_in]; w1_p: [D_in_p, D0_p]; w2_p: [D0_p, D1_p]; b1,b2: [1]."""
    B, T, d_in = x.shape
    M = B * T

    x2 = x.reshape(M, d_in)
    if plan.d_in_p != d_in:
        x2 = jnp.pad(x2, ((0, 0), (0, plan.d_in_p - d_in)))

    num_row_tiles = pl.cdiv(M, plan.tm)
    grid = (num_row_tiles, plan.k_tiles)

    eb = jnp.dtype(x.dtype).itemsize
    w_eb = jnp.dtype(w1_p.dtype).itemsize
    weight_bytes = (plan.d_in_p * plan.d0_p + plan.d0_p * plan.d1_p) * w_eb
    weight_passes = 1 if plan.k_tiles == 1 else num_row_tiles
    cost = pl.CostEstimate(
        flops=2 * M * (plan.d_in * plan.d0 + plan.d0 * plan.d1),
        transcendentals=0,
        bytes_accessed=int(M * plan.d_in_p * eb
                           + weight_bytes * weight_passes
                           + M * plan.d1_p * eb),
    )

    w_mode = pl.Buffered(plan.w_bufs)
    out = pl.pallas_call(
        ffn_kernel,
        out_shape=jax.ShapeDtypeStruct((M, plan.d1_p), x.dtype),
        grid=grid,
        in_specs=[
            pl.BlockSpec((plan.tm, plan.d_in_p), lambda i, k: (i, 0)),
            pl.BlockSpec((plan.d_in_p, plan.tk), lambda i, k: (0, k),
                         pipeline_mode=w_mode),
            pl.BlockSpec((1,), lambda i, k: (0,),
                         memory_space=pltpu.MemorySpace.SMEM),
            pl.BlockSpec((plan.tk, plan.d1_p), lambda i, k: (k, 0),
                         pipeline_mode=w_mode),
            pl.BlockSpec((1,), lambda i, k: (0,),
                         memory_space=pltpu.MemorySpace.SMEM),
        ],
        out_specs=pl.BlockSpec((plan.tm, plan.d1_p), lambda i, k: (i, 0)),
        scratch_shapes=[pltpu.VMEM((plan.tm, plan.d1_p), jnp.float32)],
        compiler_params=pltpu.CompilerParams(
            dimension_semantics=("parallel", "arbitrary"),
            vmem_limit_bytes=plan.vmem_limit,
        ),
        cost_estimate=cost,
    )(x2, w1_p, b1, w2_p, b2)

    return out[:, :plan.d1].reshape(B, T, plan.d1)


def ffn_pallas(x, w1_t, b1, w2_t, b2):
    """Convenience one-shot wrapper (plans, pads weights, applies)."""
    B, T, d_in = x.shape
    d0, d1 = w1_t.shape[1], w2_t.shape[1]
    plan = plan_ffn(B * T, d_in, d0, d1, x.dtype)
    w1_p, w2_p = pad_ffn_weights(w1_t, w2_t, plan)
    return ffn_pallas_apply(x, w1_p, b1, w2_p, b2, plan)


if __name__ == "__main__":
    # Small shapes consistent with the module's [batch, time, dim] contract.
    batch, time, input_dim, out_dim_0, out_dim_1 = 2, 8, 32, 64, 32

    key = jax.random.PRNGKey(0)
    kx, kw1, kw2 = jax.random.split(key, 3)

    x = jax.random.normal(kx, (batch, time, input_dim), dtype=jnp.float32)

    # nn.Linear weights are [out, in]; init with PyTorch's default bound
    # 1/sqrt(fan_in), then transpose to [in, out].
    bound1 = 1.0 / (input_dim ** 0.5)
    bound2 = 1.0 / (out_dim_0 ** 0.5)
    w1 = jax.random.uniform(kw1, (out_dim_0, input_dim), jnp.float32,
                            minval=-bound1, maxval=bound1)
    w2 = jax.random.uniform(kw2, (out_dim_1, out_dim_0), jnp.float32,
                            minval=-bound2, maxval=bound2)
    # Scalar biases (module inits zeros(1); nonzero values exercise the path).
    b1 = jnp.full((1,), 0.1, jnp.float32)
    b2 = jnp.full((1,), -0.05, jnp.float32)

    w1_t = w1.T  # [input_dim, out_dim_0]
    w2_t = w2.T  # [out_dim_0, out_dim_1]

    # Plan + pad weights ONCE (outside the per-step jitted apply).
    plan = plan_ffn(batch * time, input_dim, out_dim_0, out_dim_1, x.dtype)
    w1_p, w2_p = pad_ffn_weights(w1_t, w2_t, plan)

    z = ffn_pallas_apply(x, w1_p, b1, w2_p, b2, plan)
    z = jax.block_until_ready(z)

    # Pure-JAX reference check.
    y_ref = jnp.maximum(jnp.einsum("btd,do->bto", x, w1_t) + b1[0], 0.0)
    z_ref = jnp.einsum("bto,oe->bte", y_ref, w2_t) + b2[0]
    assert z.shape == (batch, time, out_dim_1)
    assert jnp.allclose(z, z_ref, atol=1e-5, rtol=1e-5)

    print("KERNEL_OK")
</pallas_src>

<mosaic_0001>
module attributes {stable_mosaic.version = 11 : i64} {
  func.func @ffn_kernel(%arg0: i32, %arg1: i32, %arg2: memref<8x128xf32, #tpu.memory_space<vmem>>, %arg3: memref<128x128xf32, #tpu.memory_space<vmem>>, %arg4: memref<1xf32, #tpu.memory_space<smem>>, %arg5: memref<128x128xf32, #tpu.memory_space<vmem>>, %arg6: memref<1xf32, #tpu.memory_space<smem>>, %arg7: memref<8x128xf32, #tpu.memory_space<vmem>>, %arg8: memref<8x128xf32, #tpu.memory_space<vmem>>) attributes {dimension_semantics = [#tpu.dimension_semantics<parallel>, #tpu.dimension_semantics<arbitrary>], iteration_bounds = array<i64: 2, 1>, scalar_prefetch = 0 : i64, scratch_operands = 1 : i64, tpu.core_type = #tpu.core_type<tc>, window_params = [{transform_indices = @transform_0, window_bounds = array<i64: 8, 128>}, {pipeline_mode = #tpu.pipeline_mode<synchronous>, transform_indices = @transform_1, window_bounds = array<i64: 128, 128>}, {transform_indices = @transform_2, window_bounds = array<i64: 1>}, {pipeline_mode = #tpu.pipeline_mode<synchronous>, transform_indices = @transform_3, window_bounds = array<i64: 128, 128>}, {transform_indices = @transform_4, window_bounds = array<i64: 1>}, {transform_indices = @transform_5, window_bounds = array<i64: 8, 128>}]} {
    %c0_i32 = arith.constant 0 : i32
    %0 = arith.cmpi eq, %arg1, %c0_i32 : i32
    %1 = arith.extui %0 : i1 to i32
    %c0_i32_0 = arith.constant 0 : i32
    %2 = arith.cmpi ne, %1, %c0_i32_0 : i32
    scf.if %2 {
      %cst_15 = arith.constant 0.000000e+00 : f32
      %19 = vector.broadcast %cst_15 : f32 to vector<8x128xf32>
      %c0_16 = arith.constant 0 : index
      %c0_17 = arith.constant 0 : index
      %20 = vector.load %arg8[%c0_16, %c0_17] : memref<8x128xf32, #tpu.memory_space<vmem>>, vector<8x128xf32>
      tpu.vector_store %arg8[%c0_16, %c0_17], %19 {strides = array<i32>} : memref<8x128xf32, #tpu.memory_space<vmem>>, vector<8x128xf32>,
    } else {
    }
    %c0 = arith.constant 0 : index
    %c0_1 = arith.constant 0 : index
    %3 = vector.load %arg2[%c0, %c0_1] : memref<8x128xf32, #tpu.memory_space<vmem>>, vector<8x128xf32>
    %c0_2 = arith.constant 0 : index
    %c0_3 = arith.constant 0 : index
    %4 = vector.load %arg3[%c0_2, %c0_3] : memref<128x128xf32, #tpu.memory_space<vmem>>, vector<128x128xf32>
    %cst = arith.constant dense<0.000000e+00> : vector<8x128xf32>
    %5 = tpu.matmul %3, %4, %cst {dimension_numbers = #tpu.dot_dimension_numbers<[1], [0], [0], [1], [0, 0, 1, 1], [], []>} : vector<8x128xf32>, vector<128x128xf32>, vector<8x128xf32> -> vector<8x128xf32>
    %c0_4 = arith.constant 0 : index
    %6 = memref.load %arg4[%c0_4] : memref<1xf32, #tpu.memory_space<smem>>
    %7 = vector.broadcast %6 : f32 to vector<8x128xf32>
    %8 = arith.addf %5, %7 : vector<8x128xf32>
    %cst_5 = arith.constant 0.000000e+00 : f32
    %9 = vector.broadcast %cst_5 : f32 to vector<8x128xf32>
    %10 = arith.maximumf %8, %9 : vector<8x128xf32>
    %c0_6 = arith.constant 0 : index
    %c0_7 = arith.constant 0 : index
    %11 = vector.load %arg8[%c0_6, %c0_7] : memref<8x128xf32, #tpu.memory_space<vmem>>, vector<8x128xf32>
    %c0_8 = arith.constant 0 : index
    %c0_9 = arith.constant 0 : index
    %12 = vector.load %arg5[%c0_8, %c0_9] : memref<128x128xf32, #tpu.memory_space<vmem>>, vector<128x128xf32>
    %cst_10 = arith.constant dense<0.000000e+00> : vector<8x128xf32>
    %13 = tpu.matmul %10, %12, %cst_10 {dimension_numbers = #tpu.dot_dimension_numbers<[1], [0], [0], [1], [0, 0, 1, 1], [], []>} : vector<8x128xf32>, vector<128x128xf32>, vector<8x128xf32> -> vector<8x128xf32>
    %14 = arith.addf %11, %13 : vector<8x128xf32>
    %c0_11 = arith.constant 0 : index
    %c0_12 = arith.constant 0 : index
    %15 = vector.load %arg8[%c0_11, %c0_12] : memref<8x128xf32, #tpu.memory_space<vmem>>, vector<8x128xf32>
    tpu.vector_store %arg8[%c0_11, %c0_12], %14 {strides = array<i32>} : memref<8x128xf32, #tpu.memory_space<vmem>>, vector<8x128xf32>,
    %c0_i32_13 = arith.constant 0 : i32
    %16 = arith.cmpi eq, %arg1, %c0_i32_13 : i32
    %17 = arith.extui %16 : i1 to i32
    %c0_i32_14 = arith.constant 0 : i32
    %18 = arith.cmpi ne, %17, %c0_i32_14 : i32
    scf.if %18 {
      %c0_15 = arith.constant 0 : index
      %c0_16 = arith.constant 0 : index
      %19 = vector.load %arg8[%c0_15, %c0_16] : memref<8x128xf32, #tpu.memory_space<vmem>>, vector<8x128xf32>
      %c0_17 = arith.constant 0 : index
      %20 = memref.load %arg6[%c0_17] : memref<1xf32, #tpu.memory_space<smem>>
      %21 = vector.broadcast %20 : f32 to vector<8x128xf32>
      %22 = arith.addf %19, %21 : vector<8x128xf32>
      %c0_18 = arith.constant 0 : index
      %c0_19 = arith.constant 0 : index
      %23 = vector.load %arg7[%c0_18, %c0_19] : memref<8x128xf32, #tpu.memory_space<vmem>>, vector<8x128xf32>
      tpu.vector_store %arg7[%c0_18, %c0_19], %22 {strides = array<i32>} : memref<8x128xf32, #tpu.memory_space<vmem>>, vector<8x128xf32>,
    } else {
    }
    return
  }
  func.func @transform_0(%arg0: i32, %arg1: i32) -> (i32, i32) {
    %c0_i32 = arith.constant 0 : i32
    %c0_i32_0 = arith.constant 0 : i32
    return %arg0, %c0_i32 : i32, i32
  }
  func.func @transform_1(%arg0: i32, %arg1: i32) -> (i32, i32) {
    %c0_i32 = arith.constant 0 : i32
    %c0_i32_0 = arith.constant 0 : i32
    return %c0_i32, %arg1 : i32, i32
  }
  func.func @transform_2(%arg0: i32, %arg1: i32) -> i32 {
    %c0_i32 = arith.constant 0 : i32
    %c0_i32_0 = arith.constant 0 : i32
    return %c0_i32 : i32
  }
  func.func @transform_3(%arg0: i32, %arg1: i32) -> (i32, i32) {
    %c0_i32 = arith.constant 0 : i32
    %c0_i32_0 = arith.constant 0 : i32
    return %arg1, %c0_i32 : i32, i32
  }
  func.func @transform_4(%arg0: i32, %arg1: i32) -> i32 {
    %c0_i32 = arith.constant 0 : i32
    %c0_i32_0 = arith.constant 0 : i32
    return %c0_i32 : i32
  }
  func.func @transform_5(%arg0: i32, %arg1: i32) -> (i32, i32) {
    %c0_i32 = arith.constant 0 : i32
    %c0_i32_0 = arith.constant 0 : i32
    return %arg0, %c0_i32 : i32, i32
  }
}

</mosaic_0001>

<bundles_post_ra>
// kernel: ffn_pallas_apply.1
= control target key start
LH: loop header
LB: loop body
LE: loop exit
PB: predicated region body
PF: predicated region fallthrough
CT: control target
= control target key end

     0   :  { %s1042_s0 = inlined_call_operand.vmem [shape: f32[16,128], index: 0, kind: input, shape index: {}]   ;;  %s1043_s1 = inlined_call_operand.hbm [shape: f32[128,128], index: 1, kind: input, shape index: {}]   ;;  %s1044_s2 = inlined_call_operand.<no memory space> [shape: f32[1], index: 2, kind: input, shape index: {}]   ;;  %s1045_s3 = inlined_call_operand.hbm [shape: f32[128,128], index: 3, kind: input, shape index: {}]   ;;  %s1046_s4 = inlined_call_operand.<no memory space> [shape: f32[1], index: 4, kind: input, shape index: {}]   ;;  %s1047_s5 = inlined_call_operand.vmem [shape: f32[16,128], index: 5, kind: output, shape index: {}]  }
   0x1   :  { %10 = sst [smem:[#allocation3]] %s1044_s2 }
   0x2   :  { %11 = sst [smem:[#allocation4]] %s1046_s4 }
   0x3   :  { %12 = vsyncpa [#allocation6], 0 }
   0x4   :  { %13 = vsyncpa [#allocation8], 0  ;;  %s906_s22 = smov 0   ;;  %s908_s23 = smov 0  }
   0x5   :  { %s910_s24 = smov 0  }
   0x6 LB: > { %s560_s2 = sadd.s32 4294967295, %s861_s24   ;;  %s31_s4 = sadd.s32 1, %s857_s23  ;;  %s861_s24 = sphi %s910_s24, %s19_s24   ;;  %s857_s23 = sphi %s908_s23, %s1057_s23   ;;  %s853_s22 = sphi %s906_s22, %s1056_s22  }
   0x7   : > { %p33_p0 = scmp.ge.s32.totalorder %s31_s4, 2  ;;  %p562_p1 = scmp.ge.s32.totalorder %s861_s24, 1 }
   0x8   : > { %p182_p2 = scmp.lt.s32.totalorder %s861_s24, 3  ;;  %p931_p4 = scmp.eq.s32.totalorder %s560_s2, 0 }
   0x9   : > { %s1059_s4 = smov (%p33_p0, %s31_s4), 0  ;;  %s863_s27 = smov [#allocation5]  }
   0xa   : > { %p927_p3 = pnand %p562_p1, %p182_p2  ;;  %s196_s28 = sshll.u32 %s863_s27, 4  ;;  %s197_s28 = int_to_ptr.vmem [resolvable:$true] %s196_s28 }
   0xb   : > { %s1052_s26 = scalar_select %p931_p4, 1, 0 }
   0xc   : > { %s1051_s25 = scalar_select %p927_p3, 1, 0 }
   0xd   : > { %p733_p5 = pneg %p927_p3  ;;  %s864_s30 = smov [#allocation7]  }
   0xe   : > { %s215_s6 = sshll.u32 %s864_s30, 4  ;;  %s775_s9 = scalar_lea.hbm %s1043_s1, 2048  ;;  %s943_s6 = int_to_ptr.vmem [resolvable:$true] %s215_s6 }
   0xf   : > { %p939_p6 = pnand %p931_p4, %p733_p5  ;;  %p776_p7 = scmp.ne.s32.totalorder %s1043_s1, %s775_s9 }
  0x10   : > { %p782_p11 = scmp.lt.u32.totalorder %s775_s9, %s1043_s1 }
  0x11   : > { %p777_p8 = pneg %p939_p6 }
  0x13   : > { %p778_p9 = pnand %p777_p8, %p776_p7 }
  0x15   : > { %p779_p10 = pneg %p778_p9 }
  0x17   : > { %p784_p12 = pnand %p782_p11, %p779_p10 }
  0x19   : > { %787 = shalt.err (!%p784_p12)
}
  0x1a   : > { %s788_s14 = scalar_lea.vmem %s197_s28, 2048  ;;  %p796_p2 = scmp.lt.s32.totalorder %s197_s28, %s197_s28 }
  0x1b   : > { %p789_p13 = scmp.ne.s32.totalorder %s197_s28, %s788_s14  ;;  %p797_p5 = scmp.lt.s32.totalorder %s788_s14, %s788_s14 }
  0x1d   : > { %p791_p0 = pnand %p789_p13, %p777_p8  ;;  %p798_p4 = por %p797_p5, %p796_p2 }
  0x1f   : > { %p792_p1 = pneg %p791_p0 }
  0x21   : > { %p799_p3 = pnand %p798_p4, %p792_p1 }
  0x23   : > { %802 = shalt.err (!%p799_p3)
}
  0x24   : > { %s865_s15 = smov 128   ;;  %s866_s16 = smov 8  }
  0x25   : > { %736 = dma.hbm_to_vmem [thread:$0]  (!%p939_p6), %s1043_s1, 2048, %s197_s28, [#allocation6], %s865_s15, %s865_s15, %s866_s16  }
  0x26   : > { %s803_s21 = scalar_lea.hbm %s1045_s3, 2048 }
  0x27   : > { %p804_p7 = scmp.ne.s32.totalorder %s1045_s3, %s803_s21  ;;  %p810_p9 = scmp.lt.u32.totalorder %s803_s21, %s1045_s3 }
  0x29   : > { %p806_p3 = pnand %p804_p7, %p777_p8 }
  0x2b   : > { %p807_p4 = pneg %p806_p3 }
  0x2d   : > { %p812_p10 = pnand %p810_p9, %p807_p4 }
  0x2f   : > { %815 = shalt.err (!%p812_p10)
}
  0x30   : > { %s816_s28 = scalar_lea.vmem %s943_s6, 2048  ;;  %p824_p0 = scmp.lt.s32.totalorder %s943_s6, %s943_s6 }
  0x31   : > { %p817_p11 = scmp.ne.s32.totalorder %s943_s6, %s816_s28  ;;  %p825_p1 = scmp.lt.s32.totalorder %s816_s28, %s816_s28 }
  0x33   : > { %p819_p12 = pnand %p817_p11, %p777_p8  ;;  %p826_p2 = por %p825_p1, %p824_p0 }
  0x35   : > { %p820_p13 = pneg %p819_p12 }
  0x37   : > { %p827_p5 = pnand %p826_p2, %p820_p13 }
  0x39   : > { %830 = shalt.err (!%p827_p5)
}
  0x3a   : > { %739 = dma.hbm_to_vmem [thread:$0]  (!%p939_p6), %s1045_s3, 2048, %s943_s6, [#allocation8], %s865_s15, %s865_s15, %s866_s16  }
  0x3b   : > { %p1054_p7 = scmp.ne.s32.totalorder %s1051_s25, 0 }
  0x3c   : > { %p1055_p3 = scmp.ne.s32.totalorder (!%p1054_p7), %s1052_s26, 0 }
  0x3d   : > { %241 = sbr.rel (%p1054_p7) target bundleno = 537 (0x219), region = 40 }
  0x44   : > { %844 = dma.done.wait (%p1055_p3), [#allocation6], 2048  }
  0x45   : > { %846 = vsyncadd (%p1055_p3), [#allocation6], 4294965248 }
  0x46   : > { %848 = dma.done.wait (%p1055_p3), [#allocation8], 2048  }
  0x47   : > { %850 = vsyncadd (%p1055_p3), [#allocation8], 4294965248  ;;  %v867_v0 = vmov 0.0|0.0   ;;  %vm868_vm0 = vmmov 0   ;;  %v869_v1 = vmov 0.0   ;;  %v286_v2 = vld [vmem:[#allocation5] sm:$0xff] }
  0x48   : > { %677 = vmatprep.subr.bf16.mxu0 %v867_v0  ;;  %639 = vmatprep.mubr.msk.f32.mxu0 %vm868_vm0, %v869_v1  ;;  %v287_v3 = vld [vmem:[#allocation5 + $0x8] sm:$0xff]  ;;  %v288_v4 = vld [vmem:[#allocation5 + $0x10] sm:$0xff]  ;;  %v289_v6 = vld [vmem:[#allocation5 + $0x18] sm:$0xff]  ;;  %p271_p6 = scmp.lt.s32.totalorder %s853_s22, 1  ;;  %s302_s10 = sld [smem:[#allocation3]] }
  0x49   : > { %701 = vmatprep.subr.bf16.mxu1 %v867_v0  ;;  %674 = vmatprep.mubr.msk.f32.mxu1 %vm868_vm0, %v869_v1  ;;  %v678_v5 = vpack.c.bf16 %v287_v3, %v286_v2  ;;  %v681_v7 = vpack.c.bf16 %v289_v6, %v288_v4  ;;  %v290_v8 = vld [vmem:[#allocation5 + $0x20] sm:$0xff]  ;;  %v291_v9 = vld [vmem:[#allocation5 + $0x28] sm:$0xff]  ;;  %v378_v12 = vld [vmem:[#allocation7 + $0x10] sm:$0xff]  ;;  %s468_s11 = sld [smem:[#allocation4]] }
  0x4a   : > { %v376_v10 = vld [vmem:[#allocation7] sm:$0xff]  ;;  %v377_v11 = vld [vmem:[#allocation7 + $0x8] sm:$0xff]  ;;  %v379_v13 = vld [vmem:[#allocation7 + $0x18] sm:$0xff]  ;;  %v684_v14 = vpack.c.bf16 %v291_v9, %v290_v8  ;;  %s1061_s22 = smov (!%p271_p6, %s853_s22), 1 }
  0x4b   : > { %679 = vmatpush3.bf16.msra.mxu0 %v678_v5  ;;  %v702_v15 = vpack.c.bf16 %v377_v11, %v376_v10  ;;  %v292_v16 = vld [vmem:[#allocation5 + $0x30] sm:$0xff]  ;;  %v293_v17 = vld [vmem:[#allocation5 + $0x38] sm:$0xff]  ;;  %v705_v18 = vpack.c.bf16 %v379_v13, %v378_v12  ;;  %v380_v19 = vld [vmem:[#allocation7 + $0x20] sm:$0xff]  ;;  %s569_s25 = sshll.u32 %s1061_s22, 3 }
  0x4c   : > { %680 = vmatprep.subr.bf16.mxu0 %v867_v0  ;;  %v381_v20 = vld [vmem:[#allocation7 + $0x28] sm:$0xff]  ;;  %v687_v21 = vpack.c.bf16 %v293_v17, %v292_v16  ;;  %v294_v22 = vld [vmem:[#allocation5 + $0x40] sm:$0xff]  ;;  %v382_v25 = vld [vmem:[#allocation7 + $0x30] sm:$0xff]  ;;  %s274_s6 = scalar_lea.vmem %s1042_s0, %s569_s25  ;;  %s279_s14 = scalar_lea.vmem %s1047_s5, %s569_s25 }
  0x4d   : > { %703 = vmatpush3.bf16.msra.mxu1 %v702_v15  ;;  %v295_v23 = vld [vmem:[#allocation5 + $0x48] sm:$0xff]  ;;  %v708_v24 = vpack.c.bf16 %v381_v20, %v380_v19  ;;  %v383_v26 = vld [vmem:[#allocation7 + $0x38] sm:$0xff]  ;;  %v296_v28 = vld [vmem:[#allocation5 + $0x50] sm:$0xff] }
  0x4e   : > { %704 = vmatprep.subr.bf16.mxu1 %v867_v0  ;;  %v690_v27 = vpack.c.bf16 %v295_v23, %v294_v22  ;;  %v297_v29 = vld [vmem:[#allocation5 + $0x58] sm:$0xff]  ;;  %v711_v30 = vpack.c.bf16 %v383_v26, %v382_v25  ;;  %v384_v31 = vld [vmem:[#allocation7 + $0x40] sm:$0xff]  ;;  %v385_v32 = vld [vmem:[#allocation7 + $0x48] sm:$0xff]  ;;  %v303_v51 = vstv %s302_s10 }
  0x4f   : > { %682 = vmatpush3.bf16.msra.mxu0 %v681_v7  ;;  %v693_v33 = vpack.c.bf16 %v297_v29, %v296_v28  ;;  %v298_v34 = vld [vmem:[#allocation5 + $0x60] sm:$0xff]  ;;  %v299_v35 = vld [vmem:[#allocation5 + $0x68] sm:$0xff]  ;;  %v714_v36 = vpack.c.bf16 %v385_v32, %v384_v31  ;;  %v386_v37 = vld [vmem:[#allocation7 + $0x50] sm:$0xff]  ;;  %v469_v56 = vstv %s468_s11 }
  0x50   : > { %683 = vmatprep.subr.bf16.mxu0 %v867_v0  ;;  %v387_v38 = vld [vmem:[#allocation7 + $0x58] sm:$0xff]  ;;  %v696_v39 = vpack.c.bf16 %v299_v35, %v298_v34  ;;  %v300_v40 = vld [vmem:[#allocation5 + $0x70] sm:$0xff]  ;;  %v388_v43 = vld [vmem:[#allocation7 + $0x60] sm:$0xff] }
  0x51   : > { %706 = vmatpush3.bf16.msra.mxu1 %v705_v18  ;;  %v301_v41 = vld [vmem:[#allocation5 + $0x78] sm:$0xff]  ;;  %v717_v42 = vpack.c.bf16 %v387_v38, %v386_v37  ;;  %v389_v44 = vld [vmem:[#allocation7 + $0x68] sm:$0xff]  ;;  %v285_v47 = vld [vmem:[%s274_s6] sm:$0xff] }
  0x52   : > { %707 = vmatprep.subr.bf16.mxu1 %v867_v0  ;;  %v699_v45 = vpack.c.bf16 %v301_v41, %v300_v40  ;;  %v720_v46 = vpack.c.bf16 %v389_v44, %v388_v43  ;;  %v390_v48 = vld [vmem:[#allocation7 + $0x70] sm:$0xff]  ;;  %v391_v49 = vld [vmem:[#allocation7 + $0x78] sm:$0xff] }
  0x53   : > { %685 = vmatpush3.bf16.msra.mxu0 %v684_v14  ;;  %v723_v50 = vpack.c.bf16 %v391_v49, %v390_v48 }
  0x54   : > { %686 = vmatprep.subr.bf16.mxu0 %v867_v0 }
  0x55   : > { %709 = vmatpush3.bf16.msra.mxu1 %v708_v24 }
  0x56   : > { %710 = vmatprep.subr.bf16.mxu1 %v867_v0 }
  0x57   : > { %688 = vmatpush3.bf16.msra.mxu0 %v687_v21 }
  0x58   : > { %689 = vmatprep.subr.bf16.mxu0 %v867_v0 }
  0x59   : > { %712 = vmatpush3.bf16.msra.mxu1 %v711_v30 }
  0x5a   : > { %713 = vmatprep.subr.bf16.mxu1 %v867_v0 }
  0x5b   : > { %691 = vmatpush3.bf16.msra.mxu0 %v690_v27 }
  0x5c   : > { %692 = vmatprep.subr.bf16.mxu0 %v867_v0 }
  0x5d   : > { %715 = vmatpush3.bf16.msra.mxu1 %v714_v36 }
  0x5e   : > { %716 = vmatprep.subr.bf16.mxu1 %v867_v0 }
  0x5f   : > { %694 = vmatpush3.bf16.msra.mxu0 %v693_v33 }
  0x60   : > { %695 = vmatprep.subr.bf16.mxu0 %v867_v0 }
  0x61   : > { %718 = vmatpush3.bf16.msra.mxu1 %v717_v42 }
  0x62   : > { %719 = vmatprep.subr.bf16.mxu1 %v867_v0 }
  0x63   : > { %697 = vmatpush3.bf16.msra.mxu0 %v696_v39 }
  0x64   : > { %698 = vmatprep.subr.bf16.mxu0 %v867_v0 }
  0x65   : > { %721 = vmatpush3.bf16.msra.mxu1 %v720_v46 }
  0x66   : > { %722 = vmatprep.subr.bf16.mxu1 %v867_v0 }
  0x67   : > { %700 = vmatpush3.bf16.msra.mxu0 %v699_v45 }
  0x69   : > { %724 = vmatpush3.bf16.msra.mxu1 %v723_v50 }
  0x6a   : > { %640 = vmatmul.mubr.f32.vlgmr.msra.gmra.mrb[0].mxu0 %v285_v47 }
 0x13d   : > { %v370_v52 = vpop.f32.mrb[0].mxu0 }
 0x13e   : > { %v371_v53 = vadd.f32 %v370_v52, %v303_v51  ;;  %v641_v54 = vpop.f32.mrb[1].mxu0 }
 0x140   : > { %v374_v55 = vmax.f32 %v371_v53, 0.0 }
 0x142   : > { %675 = vmatmul.mubr.f32.vlgmr.msra.gmra.mrb[0].mxu1 %v374_v55 }
 0x215   : > { %v458_v57 = vpop.f32.mrb[0].mxu1 }
 0x216   : > { %v470_v58 = vadd.f32 %v469_v56, %v458_v57  ;;  %v676_v59 = vpop.f32.mrb[1].mxu1 }
 0x218   : > { %471 = vst [vmem:[%s279_s14] sm:$0xff] %v470_v58 }
 0x219 PF: > { %s19_s24 = sadd.s32 1, %s861_s24   ;;  %s1056_s22 = smov %s857_s23 }
 0x21a   : > { %p16_p8 = scmp.ge.s32.totalorder %s19_s24, 4   ;;  %s1057_s23 = smov %s1059_s4 }
 0x21c   :  { %18 = sbr.rel (!%p16_p8) target bundleno = 6 (0x6), region = 89 }
 0x223   :  { %491 = vsyncpa [#allocation6], 1 }
 0x224   :  { %493 = vsyncpa [#allocation6 + $0x1], 1 }
 0x225   :  { %494 = vsyncpa [#allocation8], 1 }

</bundles_post_ra>
